<compile_context>
chip_gen: v7x
topology: tpu7x:2x2x1
jax: 0.10.0
libtpu: 0.0.40
codegen_flags: <defaults>
</compile_context>

<pallas_src>
import functools

import jax
import jax.numpy as jnp
from jax.experimental import pallas as pl
from jax.experimental.pallas import tpu as pltpu

LANES = 128
SUBLANES = 8
PAD_TILE = SUBLANES * LANES          # 1024: slab rows are always a multiple of 8


def _round_up(x, m):
    return ((x + m - 1) // m) * m


@functools.lru_cache(maxsize=1)
def _device_config():
    """(vmem_capacity_bytes, n_tensorcores) with conservative fallbacks."""
    vmem_bytes = 64 * 1024 * 1024    # conservative default (v7x per-TC VMEM)
    n_tc = 1
    try:
        info = pltpu.get_tpu_info()
        vmem_bytes = int(getattr(info, "vmem_capacity_bytes", vmem_bytes))
    except Exception:
        pass
    try:
        kind = jax.devices()[0].device_kind.lower()
    except Exception:
        kind = ""
    if "v7" in kind:                 # v7x: 2 TensorCores per chip
        n_tc = 2
    return vmem_bytes, n_tc


def _tiling_params(block_rows_cap=None):
    vmem_bytes, n_tc = _device_config()
    if vmem_bytes >= 96 * 1024 * 1024:
        # v5e / v6e: 128 MiB physical VMEM.
        block_rows_target = 8192     # 4 MiB per input per buffer (f32)
        vmem_limit = 64 * 1024 * 1024
    else:
        # v7x: 64 MiB physical VMEM per TensorCore.
        block_rows_target = 4096     # 2 MiB per input per buffer (f32)
        vmem_limit = 40 * 1024 * 1024
    if block_rows_cap is not None:   # test-only override
        block_rows_target = min(block_rows_target,
                                _round_up(int(block_rows_cap), SUBLANES))
    return block_rows_target, vmem_limit, n_tc


def _to_slab(x):
    """Flatten any shape -> lane-dense (rows, 128) slab with rows % 8 == 0.

    When numel % 1024 == 0 (the common NCHW case) this is a free reshape.
    Zero padding contributes exactly 0 to the masked-MSE sum
    (ir = vis = fuse = mask = 0  =>  res = 0)."""
    flat = jnp.ravel(x)
    rem = flat.size % PAD_TILE
    if rem:
        flat = jnp.pad(flat, (0, PAD_TILE - rem))
    return flat.reshape(-1, LANES)


def _masked_mse_block(ir, vis, fuse, m):
    """Per-tile masked-MSE in f32 (fewest VPU ops form)."""
    d_ir = fuse - ir
    d_vis = fuse - vis
    # (fuse - max(ir, vis))^2 == min(fuse - ir, fuse - vis)^2
    dmin = jnp.minimum(d_ir, d_vis)
    max_loss = dmin * dmin
    avg_loss = (d_ir * d_ir + d_vis * d_vis) * 0.5
    # m*max + (1-m)*avg == avg + m*(max - avg)
    return avg_loss + m * (max_loss - avg_loss)


def _make_sum_kernel(*, n_inner, block_rows, rows, needs_mask, two_d, smem_out):
    """Streaming sum-reduction kernel closed over static tiling params."""

    def _fold(x):
        # (block_rows, 128) -> (block_rows//8, 8, 128) splits the sublane axis
        # exactly on the (8, 128) vreg boundary (free re-view); summing the
        # leading axis keeps the accumulator a single vreg.
        return jnp.sum(x.reshape(-1, SUBLANES, LANES), axis=0)

    def kernel(ir_ref, vis_ref, fuse_ref, mask_ref, out_ref, acc_ref):
        if two_d:
            o = pl.program_id(0)     # core-split axis (CORE_PARALLEL on v7x)
            i = pl.program_id(1)     # reduction axis ("arbitrary", innermost)
        else:
            o = 0
            i = pl.program_id(0)     # reduction axis only (single TC)

        @pl.when(i == 0)
        def _init():
            acc_ref[...] = jnp.zeros_like(acc_ref)

        ir = ir_ref[...].astype(jnp.float32)
        vis = vis_ref[...].astype(jnp.float32)
        fuse = fuse_ref[...].astype(jnp.float32)
        m = mask_ref[...].astype(jnp.float32)

        res = _masked_mse_block(ir, vis, fuse, m)

        if needs_mask:
            # Only the block(s) overrunning the slab pay iota/compare/select;
            # fully in-bounds blocks do a plain accumulate.
            row0 = (o * n_inner + i) * block_rows

            @pl.when(row0 + block_rows <= rows)
            def _full():
                acc_ref[...] += _fold(res)

            @pl.when(row0 + block_rows > rows)
            def _ragged():
                local = jax.lax.broadcasted_iota(
                    jnp.int32, (block_rows, LANES), 0)
                # Select (not multiply): OOB tail data is unspecified and may
                # be NaN/Inf.
                acc_ref[...] += _fold(
                    jnp.where(row0 + local < rows, res, 0.0))
        else:
            acc_ref[...] += _fold(res)

        @pl.when(i == n_inner - 1)
        def _finalize():
            total = jnp.sum(acc_ref[...])
            if smem_out:
                out_ref[0] = total
            else:
                out_ref[0, 0, 0] = total

    return kernel


def _masked_sq_err_sum(ir_s, vis_s, fuse_s, mask_s, block_rows_cap=None):
    """Sum over the whole slab of the masked squared error (f32 scalar)."""
    rows = ir_s.shape[0]
    block_rows_target, vmem_limit, n_tc = _tiling_params(block_rows_cap)

    bytes_in = sum(int(a.size) * jnp.dtype(a.dtype).itemsize
                   for a in (ir_s, vis_s, fuse_s, mask_s))
    cost = pl.CostEstimate(flops=9 * int(ir_s.size), transcendentals=0,
                           bytes_accessed=bytes_in)

    n_split = 2 if (n_tc >= 2 and rows >= 2 * SUBLANES) else 1

    if n_split == 1:
        # ---- single-TensorCore path (v5e / v6e): plain 1-D reduction grid.
        block_rows = min(block_rows_target, rows)     # both multiples of 8
        n_inner = pl.cdiv(rows, block_rows)
        needs_mask = (n_inner * block_rows) != rows

        kernel = _make_sum_kernel(n_inner=n_inner, block_rows=block_rows,
                                  rows=rows, needs_mask=needs_mask,
                                  two_d=False, smem_out=True)
        in_spec = pl.BlockSpec((block_rows, LANES), lambda i: (i, 0))

        partials = pl.pallas_call(
            kernel,
            out_shape=jax.ShapeDtypeStruct((1,), jnp.float32),
            grid_spec=pltpu.PrefetchScalarGridSpec(
                num_scalar_prefetch=0,
                grid=(n_inner,),
                in_specs=[in_spec, in_spec, in_spec, in_spec],
                out_specs=pl.BlockSpec(memory_space=pltpu.MemorySpace.SMEM),
                scratch_shapes=[pltpu.VMEM((SUBLANES, LANES), jnp.float32)],
            ),
            compiler_params=pltpu.CompilerParams(
                dimension_semantics=("arbitrary",),
                vmem_limit_bytes=vmem_limit,
            ),
            cost_estimate=cost,
        )(ir_s, vis_s, fuse_s, mask_s)
        return jnp.sum(partials)

    # ---- 2-TensorCore path (v7x): rebalanced 2-way split, CORE_PARALLEL.
    n_blocks_t = pl.cdiv(rows, block_rows_target)
    n_inner = pl.cdiv(n_blocks_t, n_split)
    block_rows = _round_up(pl.cdiv(rows, n_split * n_inner), SUBLANES)
    n_sched = n_split * n_inner
    needs_mask = (n_sched * block_rows) != rows
    # Only for extreme sizes can the trailing scheduled block be fully OOB; if
    # so, clamp its index_map to the last valid block — its contribution is
    # zeroed by the in-kernel row mask (row0 >= rows).
    last_valid = pl.cdiv(rows, block_rows) - 1
    needs_clamp = (n_sched - 1) * block_rows >= rows

    if needs_clamp:
        def blk_idx(o, i):
            return jnp.minimum(o * n_inner + i, last_valid)
    else:
        def blk_idx(o, i):
            return o * n_inner + i

    kernel = _make_sum_kernel(n_inner=n_inner, block_rows=block_rows,
                              rows=rows, needs_mask=needs_mask,
                              two_d=True, smem_out=False)
    in_spec = pl.BlockSpec((block_rows, LANES),
                           lambda o, i: (blk_idx(o, i), 0))

    partials = pl.pallas_call(
        kernel,
        out_shape=jax.ShapeDtypeStruct((n_split, 1, 1), jnp.float32),
        grid_spec=pltpu.PrefetchScalarGridSpec(
            num_scalar_prefetch=0,
            grid=(n_split, n_inner),
            in_specs=[in_spec, in_spec, in_spec, in_spec],
            out_specs=pl.BlockSpec((1, 1, 1), lambda o, i: (o, 0, 0)),
            scratch_shapes=[pltpu.VMEM((SUBLANES, LANES), jnp.float32)],
        ),
        compiler_params=pltpu.CompilerParams(
            dimension_semantics=(pltpu.CORE_PARALLEL, pltpu.ARBITRARY),
            vmem_limit_bytes=vmem_limit,
        ),
        cost_estimate=cost,
    )(ir_s, vis_s, fuse_s, mask_s)
    return jnp.sum(partials)


def _elem_kernel(ir_ref, vis_ref, fuse_ref, mask_ref, out_ref):
    ir = ir_ref[...].astype(jnp.float32)
    vis = vis_ref[...].astype(jnp.float32)
    fuse = fuse_ref[...].astype(jnp.float32)
    m = mask_ref[...].astype(jnp.float32)
    out_ref[...] = _masked_mse_block(ir, vis, fuse, m)


def _masked_sq_err_map(ir_s, vis_s, fuse_s, mask_s, block_rows_cap=None):
    """Elementwise masked squared error over the slab (for reduction='none')."""
    rows = ir_s.shape[0]
    block_rows_target, vmem_limit, _ = _tiling_params(block_rows_cap)
    block_rows = min(block_rows_target, rows)
    n_blocks = pl.cdiv(rows, block_rows)
    spec = pl.BlockSpec((block_rows, LANES), lambda i: (i, 0))
    bytes_acc = (sum(int(a.size) * jnp.dtype(a.dtype).itemsize
                     for a in (ir_s, vis_s, fuse_s, mask_s))
                 + int(rows) * LANES * 4)
    return pl.pallas_call(
        _elem_kernel,
        out_shape=jax.ShapeDtypeStruct((rows, LANES), jnp.float32),
        grid_spec=pltpu.PrefetchScalarGridSpec(
            num_scalar_prefetch=0,
            grid=(n_blocks,),
            in_specs=[spec, spec, spec, spec],
            out_specs=spec,
        ),
        compiler_params=pltpu.CompilerParams(
            dimension_semantics=("parallel",),
            vmem_limit_bytes=vmem_limit,
        ),
        cost_estimate=pl.CostEstimate(flops=9 * int(ir_s.size),
                                      transcendentals=0,
                                      bytes_accessed=bytes_acc),
    )(ir_s, vis_s, fuse_s, mask_s)


def mask_loss(img_ir, img_vis, img_fuse, mask, *, window_size=9,
              reduction="mean", loss_weight=1.0, _block_rows_cap=None):
    """JAX/Pallas equivalent of MaskLoss.forward.

    window_size is accepted but unused, exactly as in the PyTorch module's
    forward.  `_block_rows_cap` is a test-only override of the tile size."""
    assert img_ir.shape == img_vis.shape == img_fuse.shape == mask.shape
    n_elems = int(img_ir.size)

    ir_s = _to_slab(img_ir)
    vis_s = _to_slab(img_vis)
    fuse_s = _to_slab(img_fuse)
    mask_s = _to_slab(mask)

    if reduction in ("mean", "sum"):
        total = _masked_sq_err_sum(ir_s, vis_s, fuse_s, mask_s,
                                   block_rows_cap=_block_rows_cap)
        if reduction == "mean":
            return total / jnp.float32(n_elems) * jnp.float32(loss_weight)
        return total * jnp.float32(loss_weight)
    elif reduction == "none":
        res_slab = _masked_sq_err_map(ir_s, vis_s, fuse_s, mask_s,
                                      block_rows_cap=_block_rows_cap)
        res = jnp.ravel(res_slab)[:n_elems].reshape(img_ir.shape)
        return res * jnp.float32(loss_weight)
    else:
        raise ValueError(f"unsupported reduction: {reduction!r}")


# ---------------------------------------------------------------------------
# Pure-JAX reference (mirrors the PyTorch module exactly).
# ---------------------------------------------------------------------------
def _reference(img_ir, img_vis, img_fuse, mask, reduction="mean",
               loss_weight=1.0):
    max_val = jnp.maximum(img_ir, img_vis)
    max_loss = (img_fuse - max_val) ** 2
    avg_loss = ((img_fuse - img_ir) ** 2 + (img_fuse - img_vis) ** 2) / 2
    res = mask * max_loss + (1 - mask) * avg_loss
    if reduction == "mean":
        return res.mean() * loss_weight
    elif reduction == "sum":
        return res.sum() * loss_weight
    return res * loss_weight


if __name__ == "__main__":
    key = jax.random.PRNGKey(0)

    def make_inputs(key, shape):
        k1, k2, k3, k4, key = jax.random.split(key, 5)
        ir = jax.random.uniform(k1, shape, dtype=jnp.float32)
        vis = jax.random.uniform(k2, shape, dtype=jnp.float32)
        fuse = jax.random.uniform(k3, shape, dtype=jnp.float32)
        msk = (jax.random.uniform(k4, shape) > 0.5).astype(jnp.float32)
        return ir, vis, fuse, msk, key

    # --- Test 1: small NCHW shape (single block, no masking path) ----------
    shape1 = (2, 4, 16, 16)
    ir, vis, fuse, msk, key = make_inputs(key, shape1)
    out = jax.block_until_ready(
        mask_loss(ir, vis, fuse, msk, reduction="mean", loss_weight=1.0))
    ref = _reference(ir, vis, fuse, msk, reduction="mean", loss_weight=1.0)
    assert jnp.allclose(out, ref, rtol=1e-4, atol=1e-6), (out, ref)

    # --- Test 2: multi-block inner reduction + zero-pad + ragged-tail mask
    # (tile size capped so the multi-step / pl.when-gated-mask path is
    # exercised even at small shapes on any chip generation). ---------------
    shape2 = (2, 5, 37, 64)          # 23680 elems -> 192 padded rows
    ir2, vis2, fuse2, msk2, key = make_inputs(key, shape2)
    out2 = jax.block_until_ready(
        mask_loss(ir2, vis2, fuse2, msk2, reduction="mean",
                  loss_weight=0.7, _block_rows_cap=80))
    ref2 = _reference(ir2, vis2, fuse2, msk2, reduction="mean",
                      loss_weight=0.7)
    assert jnp.allclose(out2, ref2, rtol=1e-4, atol=1e-6), (out2, ref2)

    # --- Test 3: 'sum' and 'none' reductions on the small shape ------------
    out3 = jax.block_until_ready(
        mask_loss(ir, vis, fuse, msk, reduction="sum", loss_weight=1.0))
    ref3 = _reference(ir, vis, fuse, msk, reduction="sum", loss_weight=1.0)
    assert jnp.allclose(out3, ref3, rtol=1e-4, atol=1e-4), (out3, ref3)

    out4 = jax.block_until_ready(
        mask_loss(ir, vis, fuse, msk, reduction="none", loss_weight=1.0))
    ref4 = _reference(ir, vis, fuse, msk, reduction="none", loss_weight=1.0)
    assert out4.shape == shape1
    assert jnp.allclose(out4, ref4, rtol=1e-4, atol=1e-6)

    print("KERNEL_OK")
</pallas_src>

<mosaic_0001>
module attributes {stable_mosaic.version = 11 : i64} {
  func.func @kernel(%arg0: i32, %arg1: memref<16x128xf32, #tpu.memory_space<vmem>>, %arg2: memref<16x128xf32, #tpu.memory_space<vmem>>, %arg3: memref<16x128xf32, #tpu.memory_space<vmem>>, %arg4: memref<16x128xf32, #tpu.memory_space<vmem>>, %arg5: memref<1xf32, #tpu.memory_space<smem>>, %arg6: memref<8x128xf32, #tpu.memory_space<vmem>>) attributes {dimension_semantics = [#tpu.dimension_semantics<arbitrary>], iteration_bounds = array<i64: 1>, scalar_prefetch = 0 : i64, scratch_operands = 1 : i64, tpu.core_type = #tpu.core_type<tc>, window_params = [{transform_indices = @transform_0, window_bounds = array<i64: 16, 128>}, {transform_indices = @transform_1, window_bounds = array<i64: 16, 128>}, {transform_indices = @transform_2, window_bounds = array<i64: 16, 128>}, {transform_indices = @transform_3, window_bounds = array<i64: 16, 128>}, {transform_indices = @transform_4, window_bounds = array<i64: 1>}]} {
    %c0_i32 = arith.constant 0 : i32
    %0 = arith.cmpi eq, %arg0, %c0_i32 : i32
    %1 = arith.extui %0 : i1 to i32
    %c0_i32_0 = arith.constant 0 : i32
    %2 = arith.cmpi ne, %1, %c0_i32_0 : i32
    scf.if %2 {
      %cst_15 = arith.constant 0.000000e+00 : f32
      %27 = vector.broadcast %cst_15 : f32 to vector<8x128xf32>
      %c0_16 = arith.constant 0 : index
      %c0_17 = arith.constant 0 : index
      %28 = vector.load %arg6[%c0_16, %c0_17] : memref<8x128xf32, #tpu.memory_space<vmem>>, vector<8x128xf32>
      tpu.vector_store %arg6[%c0_16, %c0_17], %27 {strides = array<i32>} : memref<8x128xf32, #tpu.memory_space<vmem>>, vector<8x128xf32>,
    } else {
    }
    %c0 = arith.constant 0 : index
    %c0_1 = arith.constant 0 : index
    %3 = vector.load %arg1[%c0, %c0_1] : memref<16x128xf32, #tpu.memory_space<vmem>>, vector<16x128xf32>
    %c0_2 = arith.constant 0 : index
    %c0_3 = arith.constant 0 : index
    %4 = vector.load %arg2[%c0_2, %c0_3] : memref<16x128xf32, #tpu.memory_space<vmem>>, vector<16x128xf32>
    %c0_4 = arith.constant 0 : index
    %c0_5 = arith.constant 0 : index
    %5 = vector.load %arg3[%c0_4, %c0_5] : memref<16x128xf32, #tpu.memory_space<vmem>>, vector<16x128xf32>
    %c0_6 = arith.constant 0 : index
    %c0_7 = arith.constant 0 : index
    %6 = vector.load %arg4[%c0_6, %c0_7] : memref<16x128xf32, #tpu.memory_space<vmem>>, vector<16x128xf32>
    %7 = arith.subf %5, %3 : vector<16x128xf32>
    %8 = arith.subf %5, %4 : vector<16x128xf32>
    %9 = arith.minimumf %7, %8 : vector<16x128xf32>
    %10 = arith.mulf %9, %9 : vector<16x128xf32>
    %11 = arith.mulf %7, %7 : vector<16x128xf32>
    %12 = arith.mulf %8, %8 : vector<16x128xf32>
    %13 = arith.addf %11, %12 : vector<16x128xf32>
    %cst = arith.constant 5.000000e-01 : f32
    %14 = vector.broadcast %cst : f32 to vector<16x128xf32>
    %15 = arith.mulf %13, %14 : vector<16x128xf32>
    %16 = arith.subf %10, %15 : vector<16x128xf32>
    %17 = arith.mulf %6, %16 : vector<16x128xf32>
    %18 = arith.addf %15, %17 : vector<16x128xf32>
    %c0_8 = arith.constant 0 : index
    %c0_9 = arith.constant 0 : index
    %19 = vector.load %arg6[%c0_8, %c0_9] : memref<8x128xf32, #tpu.memory_space<vmem>>, vector<8x128xf32>
    %20 = vector.shape_cast %18 : vector<16x128xf32> to vector<2x8x128xf32>
    %cst_10 = arith.constant dense<0.000000e+00> : vector<8x128xf32>
    %21 = vector.multi_reduction <add>, %20, %cst_10 [0] : vector<2x8x128xf32> to vector<8x128xf32>
    %22 = arith.addf %19, %21 : vector<8x128xf32>
    %c0_11 = arith.constant 0 : index
    %c0_12 = arith.constant 0 : index
    %23 = vector.load %arg6[%c0_11, %c0_12] : memref<8x128xf32, #tpu.memory_space<vmem>>, vector<8x128xf32>
    tpu.vector_store %arg6[%c0_11, %c0_12], %22 {strides = array<i32>} : memref<8x128xf32, #tpu.memory_space<vmem>>, vector<8x128xf32>,
    %c0_i32_13 = arith.constant 0 : i32
    %24 = arith.cmpi eq, %arg0, %c0_i32_13 : i32
    %25 = arith.extui %24 : i1 to i32
    %c0_i32_14 = arith.constant 0 : i32
    %26 = arith.cmpi ne, %25, %c0_i32_14 : i32
    scf.if %26 {
      %c0_15 = arith.constant 0 : index
      %c0_16 = arith.constant 0 : index
      %27 = vector.load %arg6[%c0_15, %c0_16] : memref<8x128xf32, #tpu.memory_space<vmem>>, vector<8x128xf32>
      %28 = vector.shape_cast %27 : vector<8x128xf32> to vector<1x8x128xf32>
      %cst_17 = arith.constant dense<0.000000e+00> : vector<1xf32>
      %29 = vector.multi_reduction <add>, %28, %cst_17 [1, 2] : vector<1x8x128xf32> to vector<1xf32>
      %30 = vector.shape_cast %29 : vector<1xf32> to vector<1x1x1xf32>
      %31 = vector.extract %30[0, 0, 0] : f32 from vector<1x1x1xf32>
      %c0_18 = arith.constant 0 : index
      %32 = memref.load %arg5[%c0_18] : memref<1xf32, #tpu.memory_space<smem>>
      memref.store %31, %arg5[%c0_18] : memref<1xf32, #tpu.memory_space<smem>>
    } else {
    }
    return
  }
  func.func @transform_0(%arg0: i32) -> (i32, i32) {
    %c0_i32 = arith.constant 0 : i32
    %c0_i32_0 = arith.constant 0 : i32
    return %arg0, %c0_i32 : i32, i32
  }
  func.func @transform_1(%arg0: i32) -> (i32, i32) {
    %c0_i32 = arith.constant 0 : i32
    %c0_i32_0 = arith.constant 0 : i32
    return %arg0, %c0_i32 : i32, i32
  }
  func.func @transform_2(%arg0: i32) -> (i32, i32) {
    %c0_i32 = arith.constant 0 : i32
    %c0_i32_0 = arith.constant 0 : i32
    return %arg0, %c0_i32 : i32, i32
  }
  func.func @transform_3(%arg0: i32) -> (i32, i32) {
    %c0_i32 = arith.constant 0 : i32
    %c0_i32_0 = arith.constant 0 : i32
    return %arg0, %c0_i32 : i32, i32
  }
  func.func @transform_4(%arg0: i32) -> i32 {
    %c0_i32 = arith.constant 0 : i32
    %c0_i32_0 = arith.constant 0 : i32
    return %c0_i32 : i32
  }
}

</mosaic_0001>

<bundles_post_ra>
// kernel: tpu_custom_call.1
= control target key start
LH: loop header
LB: loop body
LE: loop exit
PB: predicated region body
PF: predicated region fallthrough
CT: control target
= control target key end

     0   :  { %9 = vsyncpa [#allocation4], 0  ;;  %s376_s0 = inlined_call_operand.hbm [shape: f32[16,128], index: 0, kind: input, shape index: {}]   ;;  %s377_s1 = inlined_call_operand.hbm [shape: f32[16,128], index: 1, kind: input, shape index: {}]   ;;  %s378_s2 = inlined_call_operand.hbm [shape: f32[16,128], index: 2, kind: input, shape index: {}]   ;;  %s379_s3 = inlined_call_operand.hbm [shape: f32[16,128], index: 3, kind: input, shape index: {}]   ;;  %s380_s4 = inlined_call_operand.hbm [shape: f32[1], index: 4, kind: output, shape index: {}]  }
   0x1   :  { %10 = vsyncpa [#allocation7], 0 }
   0x2   :  { %11 = vsyncpa [#allocation10], 0 }
   0x3   :  { %12 = vsyncpa [#allocation5], 0  ;;  %s258_s15 = smov [#allocation6]   ;;  %s259_s17 = smov [#allocation3]  }
   0x4   :  { %s30_s16 = sshll.u32 %s258_s15, 4  ;;  %s18_s18 = sshll.u32 %s259_s17, 4  ;;  %s31_s16 = int_to_ptr.vmem [resolvable:$true] %s30_s16  ;;  %s290_s18 = int_to_ptr.vmem [resolvable:$true] %s18_s18 }
   0x5   :  { %s152_s21 = scalar_lea.hbm %s377_s1, 256 }
   0x6   :  { %p153_p0 = scmp.ne.s32.totalorder %s377_s1, %s152_s21  ;;  %p156_p1 = scmp.lt.u32.totalorder %s152_s21, %s377_s1 }
   0x8   :  { %p158_p2 = pnand %p156_p1, %p153_p0 }
   0xa   :  { %161 = shalt.err (!%p158_p2)
}
   0xb   :  { %s162_s26 = scalar_lea.vmem %s31_s16, 256  ;;  %p167_p4 = scmp.lt.s32.totalorder %s31_s16, %s31_s16 }
   0xc   :  { %p163_p3 = scmp.ne.s32.totalorder %s31_s16, %s162_s26  ;;  %p168_p5 = scmp.lt.s32.totalorder %s162_s26, %s162_s26 }
   0xe   :  { %p169_p6 = por %p168_p5, %p167_p4 }
  0x10   :  { %p170_p7 = pnand %p169_p6, %p163_p3 }
  0x12   :  { %173 = shalt.err (!%p170_p7)
}
  0x13   :  { %s260_s27 = smov 128   ;;  %s261_s28 = smov 8  }
  0x14   :  { %36 = dma.hbm_to_vmem [thread:$0]  %s377_s1, 256, %s31_s16, [#allocation7], %s260_s27, %s260_s27, %s261_s28  }
  0x15   :  { %s174_s7 = scalar_lea.hbm %s376_s0, 256 }
  0x16   :  { %p175_p8 = scmp.ne.s32.totalorder %s376_s0, %s174_s7  ;;  %p178_p9 = scmp.lt.u32.totalorder %s174_s7, %s376_s0 }
  0x18   :  { %p180_p10 = pnand %p178_p9, %p175_p8 }
  0x1a   :  { %183 = shalt.err (!%p180_p10)
}
  0x1b   :  { %s184_s12 = scalar_lea.vmem %s290_s18, 256  ;;  %p189_p12 = scmp.lt.s32.totalorder %s290_s18, %s290_s18 }
  0x1c   :  { %p185_p11 = scmp.ne.s32.totalorder %s290_s18, %s184_s12  ;;  %p190_p13 = scmp.lt.s32.totalorder %s184_s12, %s184_s12 }
  0x1e   :  { %p191_p0 = por %p190_p13, %p189_p12 }
  0x20   :  { %p192_p1 = pnand %p191_p0, %p185_p11 }
  0x22   :  { %195 = shalt.err (!%p192_p1)
}
  0x23   :  { %24 = dma.hbm_to_vmem [thread:$0]  %s376_s0, 256, %s290_s18, [#allocation4], %s260_s27, %s260_s27, %s261_s28  }
  0x24   :  { %s262_s14 = smov [#allocation8]   ;;  %s263_s16 = smov [#allocation9]  }
  0x25   :  { %s42_s15 = sshll.u32 %s262_s14, 4  ;;  %s54_s17 = sshll.u32 %s263_s16, 4  ;;  %s43_s15 = int_to_ptr.vmem [resolvable:$true] %s42_s15  ;;  %s327_s17 = int_to_ptr.vmem [resolvable:$true] %s54_s17 }
  0x26   :  { %s196_s21 = scalar_lea.hbm %s378_s2, 256 }
  0x27   :  { %p197_p2 = scmp.ne.s32.totalorder %s378_s2, %s196_s21  ;;  %p200_p3 = scmp.lt.u32.totalorder %s196_s21, %s378_s2 }
  0x29   :  { %p202_p4 = pnand %p200_p3, %p197_p2 }
  0x2b   :  { %205 = shalt.err (!%p202_p4)
}
  0x2c   :  { %s206_s0 = scalar_lea.vmem %s43_s15, 256  ;;  %p211_p6 = scmp.lt.s32.totalorder %s43_s15, %s43_s15 }
  0x2d   :  { %p207_p5 = scmp.ne.s32.totalorder %s43_s15, %s206_s0  ;;  %p212_p7 = scmp.lt.s32.totalorder %s206_s0, %s206_s0 }
  0x2f   :  { %p213_p8 = por %p212_p7, %p211_p6 }
  0x31   :  { %p214_p9 = pnand %p213_p8, %p207_p5 }
  0x33   :  { %217 = shalt.err (!%p214_p9)
}
  0x34   :  { %48 = dma.hbm_to_vmem [thread:$0]  %s378_s2, 256, %s43_s15, [#allocation7], %s260_s27, %s260_s27, %s261_s28  }
  0x35   :  { %s218_s5 = scalar_lea.hbm %s379_s3, 256 }
  0x36   :  { %p219_p10 = scmp.ne.s32.totalorder %s379_s3, %s218_s5  ;;  %p222_p11 = scmp.lt.u32.totalorder %s218_s5, %s379_s3 }
  0x38   :  { %p224_p12 = pnand %p222_p11, %p219_p10 }
  0x3a   :  { %227 = shalt.err (!%p224_p12)
}
  0x3b   :  { %s228_s10 = scalar_lea.vmem %s327_s17, 256  ;;  %p233_p0 = scmp.lt.s32.totalorder %s327_s17, %s327_s17 }
  0x3c   :  { %p229_p13 = scmp.ne.s32.totalorder %s327_s17, %s228_s10  ;;  %p234_p1 = scmp.lt.s32.totalorder %s228_s10, %s228_s10 }
  0x3e   :  { %p235_p2 = por %p234_p1, %p233_p0 }
  0x40   :  { %p236_p3 = pnand %p235_p2, %p229_p13 }
  0x42   :  { %239 = shalt.err (!%p236_p3)
}
  0x43   :  { %60 = dma.hbm_to_vmem [thread:$0]  %s379_s3, 256, %s327_s17, [#allocation10], %s260_s27, %s260_s27, %s261_s28  }
  0x44   :  { %250 = dma.done.wait [#allocation4], 256  }
  0x45   :  { %251 = vsyncadd [#allocation4], 4294967040 }
  0x46   :  { %252 = dma.done.wait [#allocation7], 512  }
  0x47   :  { %253 = vsyncadd [#allocation7], 4294966784 }
  0x48   :  { %254 = dma.done.wait [#allocation10], 256  }
  0x49   :  { %255 = vsyncadd [#allocation10], 4294967040  ;;  %v78_v0 = vld [vmem:[#allocation3] sm:$0xff]  ;;  %v79_v1 = vld [vmem:[#allocation3 + $0x8] sm:$0xff]  ;;  %s240_s12 = scalar_lea.hbm %s380_s4, 16 }
  0x4a   :  { %v80_v2 = vld [vmem:[#allocation6] sm:$0xff]  ;;  %v81_v3 = vld [vmem:[#allocation6 + $0x8] sm:$0xff]  ;;  %v82_v4 = vld [vmem:[#allocation8] sm:$0xff]  ;;  %p241_p4 = scmp.ne.s32.totalorder %s380_s4, %s240_s12  ;;  %p244_p5 = scmp.lt.u32.totalorder %s240_s12, %s380_s4 }
  0x4b   :  { %v83_v5 = vld [vmem:[#allocation8 + $0x8] sm:$0xff]  ;;  %v86_v6 = vsub.f32 %v82_v4, %v78_v0  ;;  %v88_v8 = vsub.f32 %v82_v4, %v80_v2  ;;  %v84_v22 = vld [vmem:[#allocation9] sm:$0xff]  ;;  %v85_v23 = vld [vmem:[#allocation9 + $0x8] sm:$0xff] }
  0x4c   :  { %v87_v7 = vsub.f32 %v83_v5, %v79_v1  ;;  %v89_v9 = vsub.f32 %v83_v5, %v81_v3  ;;  %p246_p6 = pnand %p244_p5, %p241_p4 }
  0x4d   :  { %v90_v10 = vmin.f32 %v86_v6, %v88_v8  ;;  %v94_v12 = vmul.f32 %v86_v6, %v86_v6  ;;  %v96_v14 = vmul.f32 %v88_v8, %v88_v8 }
  0x4e   :  { %v91_v11 = vmin.f32 %v87_v7, %v89_v9  ;;  %v95_v13 = vmul.f32 %v87_v7, %v87_v7  ;;  %v97_v15 = vmul.f32 %v89_v9, %v89_v9 }
  0x4f   :  { %v92_v16 = vmul.f32 %v90_v10, %v90_v10  ;;  %v98_v18 = vadd.f32 %v96_v14, %v94_v12 }
  0x50   :  { %v93_v17 = vmul.f32 %v91_v11, %v91_v11  ;;  %v99_v19 = vadd.f32 %v97_v15, %v95_v13 }
  0x51   :  { %v100_v20 = vmul.f32 0.5, %v98_v18 }
  0x52   :  { %v101_v21 = vmul.f32 0.5, %v99_v19 }
  0x53   :  { %v102_v24 = vsub.f32 %v92_v16, %v100_v20 }
  0x54   :  { %v103_v25 = vsub.f32 %v93_v17, %v101_v21 }
  0x55   :  { %v104_v26 = vmul.f32 %v102_v24, %v84_v22 }
  0x56   :  { %v105_v27 = vmul.f32 %v103_v25, %v85_v23 }
  0x57   :  { %v106_v28 = vadd.f32 %v104_v26, %v100_v20 }
  0x58   :  { %v107_v29 = vadd.f32 %v105_v27, %v101_v21 }
  0x5a   :  { %v109_v30 = vadd.f32 %v107_v29, %v106_v28 }
  0x5c   :  { %116 = vadd.xlane.f32.xlu0 %v109_v30 }
  0xe9   :  { %v117_v31 = vpop.xlane.xlu0 %116 }
  0xea   :  { %v118_v32 = vrot.slane %v117_v31, 4 }
  0xec   :  { %v119_v33 = vadd.f32 %v118_v32, %v117_v31 }
  0xee   :  { %v120_v34 = vrot.slane %v119_v33, 2 }
  0xf0   :  { %v121_v35 = vadd.f32 %v120_v34, %v119_v33 }
  0xf2   :  { %v122_v36 = vrot.slane %v121_v35, 1 }
  0xf4   :  { %v123_v37 = vadd.f32 %v122_v36, %v121_v35 }
  0xf6   :  { %143 = vpush %v123_v37 }
 0x127   :  { %s144_s3 = spop %143 }
 0x128   :  { %126 = sst [smem:[#allocation11]] %s144_s3 }
 0x129   :  { %249 = shalt.err (!%p246_p6)
}
 0x12a   :  { %s264_s16 = smov [#allocation11]  }
 0x12b   :  { %134 = dma.smem_to_hbm %s264_s16, 16, %s380_s4, [#allocation5]  }
 0x12c   :  { %256 = dma.done.wait [#allocation5], 16  }
 0x12d   :  { %257 = vsyncadd [#allocation5], 4294967280 }
 0x12e   :  { %138 = sfence }
 0x12f   :  { %139 = vsyncpa [#allocation4], 1 }
 0x130   :  { %140 = vsyncpa [#allocation7], 1 }
 0x131   :  { %141 = vsyncpa [#allocation10], 1 }
 0x132   :  { %142 = vsyncpa [#allocation5], 1 }

</bundles_post_ra>
